<compile_context>
chip_gen: v7x
topology: tpu7x:2x2x1
jax: 0.10.0
libtpu: 0.0.40
codegen_flags: <defaults>
</compile_context>

<pallas_src>
import functools

import jax
import jax.numpy as jnp
from jax.experimental import pallas as pl
from jax.experimental.pallas import tpu as pltpu

LN_EPS = 1e-5


# -----------------------------------------------------------------------------
# Pallas kernel: one GCN layer per grid step (+ projection at step 0,
# classifier at the last step).
# -----------------------------------------------------------------------------
def residual_gcn_kernel(x_ref,      # VMEM (N, Fin)   input node features
                        wp_ref,     # VMEM (Fin, H)   projection weight
                        bp_ref,     # VMEM (1, H)     projection bias
                        lng_ref,    # VMEM (1, H)     shared LayerNorm gamma
                        lnb_ref,    # VMEM (1, H)     shared LayerNorm beta
                        wq_ref,     # VMEM (1, H)     gate q weight (row)
                        qb_ref,     # VMEM (1, 1)     gate q bias
                        a_ref,      # VMEM (N, N)     normalized adjacency, bf16
                        wl_ref,     # VMEM (1, H, H)  this layer's GCN weight (streamed)
                        wc_ref,     # VMEM (H, Opad)  classifier weight (lane-padded)
                        bc_ref,     # VMEM (1, Opad)  classifier bias   (lane-padded)
                        out_ref,    # VMEM (N, Opad)  output logits (lane-dense slab)
                        h_ref,      # VMEM scratch (N, H)  current hidden state
                        h0_ref,     # VMEM scratch (N, H)  initial residual h0
                        *, lamda, layers, project):
    l = pl.program_id(0)

    def layer_norm(v):
        mu = jnp.mean(v, axis=-1, keepdims=True)
        c = v - mu
        var = jnp.mean(c * c, axis=-1, keepdims=True)
        return c * jax.lax.rsqrt(var + LN_EPS) * lng_ref[...] + lnb_ref[...]

    # --- step 0: input projection + shared LayerNorm -> h0 = h ----------------
    @pl.when(l == 0)
    def _init():
        if project:
            h0 = layer_norm(
                jnp.dot(x_ref[...], wp_ref[...],
                        preferred_element_type=jnp.float32) + bp_ref[...])
        else:
            h0 = x_ref[...].astype(jnp.float32)
        h0_ref[...] = h0
        h_ref[...] = h0

    # --- one GraphConvolution layer --------------------------------------------
    # TODO(synk): F.dropout is identity in eval mode; training-mode RNG dropout
    #             is not implemented.
    h = h_ref[...]

    # per-node gate s = sigmoid(q(h) - 1): VPU mult + lane reduce (no 1-wide matmul)
    logit = jnp.sum(h * wq_ref[...], axis=-1, keepdims=True) + qb_ref[...] - 1.0
    s = 1.0 / (1.0 + jnp.exp(-logit))                               # (N, 1)

    # propagate: bf16 x bf16 inputs, f32 accumulation on the MXU
    hi = jnp.dot(a_ref[...], h.astype(jnp.bfloat16),
                 preferred_element_type=jnp.float32)

    # adaptive initial residual:  (1-s)*hi + s*h0  ==  hi + s*(h0 - hi)
    support = hi + s * (h0_ref[...] - hi)

    # dynamic linear residual:  th*(sup@W) + (1-th)*sup  ==  sup + th*(sup@W - sup)
    theta = lamda / (l.astype(jnp.float32) + 1.0)
    dlr = jnp.dot(support, wl_ref[0], preferred_element_type=jnp.float32)
    h_new = support + theta * (dlr - support)

    h_ref[...] = layer_norm(jnp.maximum(h_new, 0.0))                # ReLU + LN

    # --- last step: classifier (lane-dense padded output slab) -----------------
    @pl.when(l == layers - 1)
    def _finalize():
        out_ref[...] = (jnp.dot(h_ref[...], wc_ref[...],
                                preferred_element_type=jnp.float32) + bc_ref[...])


# -----------------------------------------------------------------------------
# Graph preprocessing (done ONCE per graph, outside the per-call path)
# -----------------------------------------------------------------------------
def build_norm_adj(edge_index, num_nodes):
    """sys_normalized_adjacency: D^-1/2 A D^-1/2 (row-sum degree), no self-loops,
    duplicate edges accumulate, zero-degree rows clamped to degree 1."""
    row, col = edge_index[0], edge_index[1]
    a = jnp.zeros((num_nodes, num_nodes), jnp.float32).at[row, col].add(1.0)
    deg = jnp.sum(a, axis=1)
    deg = jnp.where(deg == 0, 1.0, deg)       # (row_sum == 0) * 1 + row_sum
    d = jax.lax.rsqrt(deg)
    return a * d[:, None] * d[None, :]


# -----------------------------------------------------------------------------
# Wrapper
# -----------------------------------------------------------------------------
def residual_gcn_forward(x, a_hat, params, *, lamda, layers, project=True):
    n = x.shape[0]
    hidden = params["wl"].shape[-1]
    out_size = params["wc"].shape[1]
    o_pad = 128 * pl.cdiv(out_size, 128)      # lane-dense padded output slab

    # Pad the classifier to a full lane width (unmasked stores); slice after.
    wc_p = jnp.zeros((hidden, o_pad), jnp.float32).at[:, :out_size].set(params["wc"])
    bc_p = jnp.zeros((1, o_pad), jnp.float32).at[:, :out_size].set(params["bc"])

    # bf16 adjacency: halves HBM/VMEM traffic of the largest buffer; the
    # propagate matmul accumulates in f32.
    a_bf16 = a_hat.astype(jnp.bfloat16)

    kernel = functools.partial(residual_gcn_kernel, lamda=float(lamda),
                               layers=int(layers), project=bool(project))
    const2 = lambda l: (0, 0)                 # resident blocks: fetched once at step 0

    out_pad = pl.pallas_call(
        kernel,
        out_shape=jax.ShapeDtypeStruct((n, o_pad), jnp.float32),
        grid=(layers,),
        in_specs=[
            pl.BlockSpec(x.shape, const2),                            # x
            pl.BlockSpec(params["wp"].shape, const2),                 # Wp
            pl.BlockSpec((1, hidden), const2),                        # bp
            pl.BlockSpec((1, hidden), const2),                        # LN gamma
            pl.BlockSpec((1, hidden), const2),                        # LN beta
            pl.BlockSpec((1, hidden), const2),                        # q weight
            pl.BlockSpec((1, 1), const2),                             # q bias
            pl.BlockSpec((n, n), const2),                             # A_hat (bf16)
            pl.BlockSpec((1, hidden, hidden), lambda l: (l, 0, 0)),   # W_l (streamed)
            pl.BlockSpec((hidden, o_pad), const2),                    # Wc (padded)
            pl.BlockSpec((1, o_pad), const2),                         # bc (padded)
        ],
        out_specs=pl.BlockSpec((n, o_pad), const2),
        scratch_shapes=[pltpu.VMEM((n, hidden), jnp.float32),         # h
                        pltpu.VMEM((n, hidden), jnp.float32)],        # h0
        compiler_params=pltpu.CompilerParams(
            dimension_semantics=("arbitrary",),     # layer axis is sequential
            vmem_limit_bytes=64 * 1024 * 1024),
    )(x, params["wp"], params["bp"], params["ln_g"], params["ln_b"],
      params["wq"], params["qb"], a_bf16, params["wl"], wc_p, bc_p)

    # TODO(synk): save_log intermediate-activation capture not implemented.
    return out_pad[:, :out_size], {}


# -----------------------------------------------------------------------------
# Pure-JAX references for validation
# -----------------------------------------------------------------------------
def residual_gcn_reference(x, a_hat, params, *, lamda, layers, project=True,
                           match_kernel=False):
    hp = jax.lax.Precision.HIGHEST
    g, b = params["ln_g"], params["ln_b"]

    def ln(v):
        mu = jnp.mean(v, axis=-1, keepdims=True)
        c = v - mu
        var = jnp.mean(c * c, axis=-1, keepdims=True)
        return c * jax.lax.rsqrt(var + LN_EPS) * g + b

    def sigmoid(z):
        return 1.0 / (1.0 + jnp.exp(-z))

    h0 = (ln(jnp.dot(x, params["wp"], precision=hp) + params["bp"])
          if project else x)
    h = h0
    a_bf16 = a_hat.astype(jnp.bfloat16)
    for i in range(layers):
        s = sigmoid(jnp.sum(h * params["wq"], axis=-1, keepdims=True)
                    + params["qb"] - 1.0)
        theta = lamda / (i + 1.0)
        if match_kernel:     # mirror the kernel's mixed precision & algebra
            hi = jnp.dot(a_bf16, h.astype(jnp.bfloat16),
                         preferred_element_type=jnp.float32)
            support = hi + s * (h0 - hi)
            dlr = jnp.dot(support, params["wl"][i], precision=hp)
            h = support + theta * (dlr - support)
        else:                # pure-f32 PyTorch semantics
            hi = jnp.dot(a_hat, h, precision=hp)
            support = (1.0 - s) * hi + s * h0
            h = (theta * jnp.dot(support, params["wl"][i], precision=hp)
                 + (1.0 - theta) * support)
        h = ln(jnp.maximum(h, 0.0))
    return jnp.dot(h, params["wc"], precision=hp) + params["bc"]


# -----------------------------------------------------------------------------
if __name__ == "__main__":
    # Small config consistent with the module (HIDDEN chosen lane-aligned).
    N_NODES, INPUT_SIZE, HIDDEN, LAYERS, OUT_SIZE = 16, 64, 128, 8, 4
    LAMDA = 0.5

    key = jax.random.PRNGKey(0)
    ks = jax.random.split(key, 10)

    params = {
        "wp": jax.random.normal(ks[0], (INPUT_SIZE, HIDDEN), jnp.float32)
              / jnp.sqrt(float(INPUT_SIZE)),
        "bp": jax.random.normal(ks[1], (1, HIDDEN), jnp.float32) * 0.01,
        "ln_g": 1.0 + 0.1 * jax.random.normal(ks[2], (1, HIDDEN), jnp.float32),
        "ln_b": 0.05 * jax.random.normal(ks[3], (1, HIDDEN), jnp.float32),
        "wq": jax.random.normal(ks[4], (1, HIDDEN), jnp.float32)
              / jnp.sqrt(float(HIDDEN)),
        "qb": 0.1 * jax.random.normal(ks[5], (1, 1), jnp.float32),
        "wl": jax.random.normal(ks[6], (LAYERS, HIDDEN, HIDDEN), jnp.float32)
              / jnp.sqrt(float(HIDDEN)),
        "wc": jax.random.normal(ks[7], (HIDDEN, OUT_SIZE), jnp.float32)
              / jnp.sqrt(float(HIDDEN)),
        "bc": jax.random.normal(ks[8], (1, OUT_SIZE), jnp.float32) * 0.01,
    }

    x = jax.random.normal(ks[9], (N_NODES, INPUT_SIZE), jnp.float32)

    # Undirected ring graph (both edge directions, no self-loops — matches
    # sys_normalized_adjacency which never adds them).
    src = jnp.arange(N_NODES, dtype=jnp.int32)
    dst = (src + 1) % N_NODES
    edge_index = jnp.stack([jnp.concatenate([src, dst]),
                            jnp.concatenate([dst, src])], axis=0)

    # A_hat is graph-invariant: built once, outside the forward path.
    a_hat = build_norm_adj(edge_index, N_NODES)

    out, _log = residual_gcn_forward(x, a_hat, params, lamda=LAMDA, layers=LAYERS)
    out = jax.block_until_ready(out)
    assert out.shape == (N_NODES, OUT_SIZE)

    # Tight check against a reference that mirrors the kernel's mixed precision.
    ref_match = residual_gcn_reference(x, a_hat, params, lamda=LAMDA,
                                       layers=LAYERS, match_kernel=True)
    err_match = float(jnp.max(jnp.abs(out - ref_match)))
    assert jnp.allclose(out, ref_match, atol=5e-3, rtol=5e-3), (
        f"matched-precision max abs err {err_match}")

    # Loose sanity check against pure-f32 semantics (bounded bf16-propagate drift).
    ref_f32 = residual_gcn_reference(x, a_hat, params, lamda=LAMDA,
                                     layers=LAYERS, match_kernel=False)
    err_f32 = float(jnp.max(jnp.abs(out - ref_f32)))
    assert jnp.allclose(out, ref_f32, atol=5e-2, rtol=5e-2), (
        f"f32-reference max abs err {err_f32}")

    print("KERNEL_OK")
</pallas_src>

<mosaic_0001>
module attributes {stable_mosaic.version = 11 : i64} {
  func.func @residual_gcn_kernel(%arg0: i32, %arg1: memref<16x64xf32, #tpu.memory_space<vmem>>, %arg2: memref<64x128xf32, #tpu.memory_space<vmem>>, %arg3: memref<1x128xf32, #tpu.memory_space<vmem>>, %arg4: memref<1x128xf32, #tpu.memory_space<vmem>>, %arg5: memref<1x128xf32, #tpu.memory_space<vmem>>, %arg6: memref<1x128xf32, #tpu.memory_space<vmem>>, %arg7: memref<1x1xf32, #tpu.memory_space<vmem>>, %arg8: memref<16x16xbf16, #tpu.memory_space<vmem>>, %arg9: memref<1x128x128xf32, #tpu.memory_space<vmem>>, %arg10: memref<128x128xf32, #tpu.memory_space<vmem>>, %arg11: memref<1x128xf32, #tpu.memory_space<vmem>>, %arg12: memref<16x128xf32, #tpu.memory_space<vmem>>, %arg13: memref<16x128xf32, #tpu.memory_space<vmem>>, %arg14: memref<16x128xf32, #tpu.memory_space<vmem>>) attributes {dimension_semantics = [#tpu.dimension_semantics<arbitrary>], iteration_bounds = array<i64: 8>, scalar_prefetch = 0 : i64, scratch_operands = 2 : i64, tpu.core_type = #tpu.core_type<tc>, window_params = [{pipeline_mode = #tpu.pipeline_mode<synchronous>, transform_indices = @transform_0, window_bounds = array<i64: 16, 64>}, {pipeline_mode = #tpu.pipeline_mode<synchronous>, transform_indices = @transform_1, window_bounds = array<i64: 64, 128>}, {pipeline_mode = #tpu.pipeline_mode<synchronous>, transform_indices = @transform_2, window_bounds = array<i64: 1, 128>}, {pipeline_mode = #tpu.pipeline_mode<synchronous>, transform_indices = @transform_3, window_bounds = array<i64: 1, 128>}, {pipeline_mode = #tpu.pipeline_mode<synchronous>, transform_indices = @transform_4, window_bounds = array<i64: 1, 128>}, {pipeline_mode = #tpu.pipeline_mode<synchronous>, transform_indices = @transform_5, window_bounds = array<i64: 1, 128>}, {pipeline_mode = #tpu.pipeline_mode<synchronous>, transform_indices = @transform_6, window_bounds = array<i64: 1, 1>}, {pipeline_mode = #tpu.pipeline_mode<synchronous>, transform_indices = @transform_7, window_bounds = array<i64: 16, 16>}, {transform_indices = @transform_8, window_bounds = array<i64: 1, 128, 128>}, {pipeline_mode = #tpu.pipeline_mode<synchronous>, transform_indices = @transform_9, window_bounds = array<i64: 128, 128>}, {pipeline_mode = #tpu.pipeline_mode<synchronous>, transform_indices = @transform_10, window_bounds = array<i64: 1, 128>}, {pipeline_mode = #tpu.pipeline_mode<synchronous>, transform_indices = @transform_11, window_bounds = array<i64: 16, 128>}]} {
    %c0_i32 = arith.constant 0 : i32
    %0 = arith.cmpi eq, %arg0, %c0_i32 : i32
    %1 = arith.extui %0 : i1 to i32
    %c0_i32_0 = arith.constant 0 : i32
    %2 = arith.cmpi ne, %1, %c0_i32_0 : i32
    scf.if %2 {
      %c0_34 = arith.constant 0 : index
      %c0_35 = arith.constant 0 : index
      %67 = vector.load %arg1[%c0_34, %c0_35] : memref<16x64xf32, #tpu.memory_space<vmem>>, vector<16x64xf32>
      %c0_36 = arith.constant 0 : index
      %c0_37 = arith.constant 0 : index
      %68 = vector.load %arg2[%c0_36, %c0_37] : memref<64x128xf32, #tpu.memory_space<vmem>>, vector<64x128xf32>
      %cst_38 = arith.constant dense<0.000000e+00> : vector<16x128xf32>
      %69 = tpu.matmul %67, %68, %cst_38 {dimension_numbers = #tpu.dot_dimension_numbers<[1], [0], [0], [1], [0, 0, 1, 1], [], []>} : vector<16x64xf32>, vector<64x128xf32>, vector<16x128xf32> -> vector<16x128xf32>
      %c0_39 = arith.constant 0 : index
      %c0_40 = arith.constant 0 : index
      %70 = vector.load %arg3[%c0_39, %c0_40] : memref<1x128xf32, #tpu.memory_space<vmem>>, vector<1x128xf32>
      %71 = vector.broadcast %70 : vector<1x128xf32> to vector<16x128xf32>
      %72 = arith.addf %69, %71 : vector<16x128xf32>
      %cst_41 = arith.constant dense<0.000000e+00> : vector<16xf32>
      %73 = vector.multi_reduction <add>, %72, %cst_41 [1] : vector<16x128xf32> to vector<16xf32>
      %74 = vector.shape_cast %73 : vector<16xf32> to vector<16x1xf32>
      %cst_42 = arith.constant 1.280000e+02 : f32
      %75 = vector.broadcast %cst_42 : f32 to vector<16x1xf32>
      %76 = arith.divf %74, %75 : vector<16x1xf32>
      %77 = vector.broadcast %76 : vector<16x1xf32> to vector<16x128xf32>
      %78 = arith.subf %72, %77 : vector<16x128xf32>
      %79 = arith.mulf %78, %78 : vector<16x128xf32>
      %cst_43 = arith.constant dense<0.000000e+00> : vector<16xf32>
      %80 = vector.multi_reduction <add>, %79, %cst_43 [1] : vector<16x128xf32> to vector<16xf32>
      %81 = vector.shape_cast %80 : vector<16xf32> to vector<16x1xf32>
      %cst_44 = arith.constant 1.280000e+02 : f32
      %82 = vector.broadcast %cst_44 : f32 to vector<16x1xf32>
      %83 = arith.divf %81, %82 : vector<16x1xf32>
      %cst_45 = arith.constant 9.99999974E-6 : f32
      %84 = vector.broadcast %cst_45 : f32 to vector<16x1xf32>
      %85 = arith.addf %83, %84 : vector<16x1xf32>
      %86 = math.rsqrt %85 : vector<16x1xf32>
      %87 = vector.broadcast %86 : vector<16x1xf32> to vector<16x128xf32>
      %88 = arith.mulf %78, %87 : vector<16x128xf32>
      %c0_46 = arith.constant 0 : index
      %c0_47 = arith.constant 0 : index
      %89 = vector.load %arg4[%c0_46, %c0_47] : memref<1x128xf32, #tpu.memory_space<vmem>>, vector<1x128xf32>
      %90 = vector.broadcast %89 : vector<1x128xf32> to vector<16x128xf32>
      %91 = arith.mulf %88, %90 : vector<16x128xf32>
      %c0_48 = arith.constant 0 : index
      %c0_49 = arith.constant 0 : index
      %92 = vector.load %arg5[%c0_48, %c0_49] : memref<1x128xf32, #tpu.memory_space<vmem>>, vector<1x128xf32>
      %93 = vector.broadcast %92 : vector<1x128xf32> to vector<16x128xf32>
      %94 = arith.addf %91, %93 : vector<16x128xf32>
      %c0_50 = arith.constant 0 : index
      %c0_51 = arith.constant 0 : index
      %95 = vector.load %arg14[%c0_50, %c0_51] : memref<16x128xf32, #tpu.memory_space<vmem>>, vector<16x128xf32>
      tpu.vector_store %arg14[%c0_50, %c0_51], %94 {strides = array<i32>} : memref<16x128xf32, #tpu.memory_space<vmem>>, vector<16x128xf32>,
      %c0_52 = arith.constant 0 : index
      %c0_53 = arith.constant 0 : index
      %96 = vector.load %arg13[%c0_52, %c0_53] : memref<16x128xf32, #tpu.memory_space<vmem>>, vector<16x128xf32>
      tpu.vector_store %arg13[%c0_52, %c0_53], %94 {strides = array<i32>} : memref<16x128xf32, #tpu.memory_space<vmem>>, vector<16x128xf32>,
    } else {
    }
    %c0 = arith.constant 0 : index
    %c0_1 = arith.constant 0 : index
    %3 = vector.load %arg13[%c0, %c0_1] : memref<16x128xf32, #tpu.memory_space<vmem>>, vector<16x128xf32>
    %c0_2 = arith.constant 0 : index
    %c0_3 = arith.constant 0 : index
    %4 = vector.load %arg6[%c0_2, %c0_3] : memref<1x128xf32, #tpu.memory_space<vmem>>, vector<1x128xf32>
    %5 = vector.broadcast %4 : vector<1x128xf32> to vector<16x128xf32>
    %6 = arith.mulf %3, %5 : vector<16x128xf32>
    %cst = arith.constant dense<0.000000e+00> : vector<16xf32>
    %7 = vector.multi_reduction <add>, %6, %cst [1] : vector<16x128xf32> to vector<16xf32>
    %8 = vector.shape_cast %7 : vector<16xf32> to vector<16x1xf32>
    %c0_4 = arith.constant 0 : index
    %c0_5 = arith.constant 0 : index
    %9 = vector.load %arg7[%c0_4, %c0_5] : memref<1x1xf32, #tpu.memory_space<vmem>>, vector<1x1xf32>
    %10 = vector.broadcast %9 : vector<1x1xf32> to vector<16x1xf32>
    %11 = arith.addf %8, %10 : vector<16x1xf32>
    %cst_6 = arith.constant 1.000000e+00 : f32
    %12 = vector.broadcast %cst_6 : f32 to vector<16x1xf32>
    %13 = arith.subf %11, %12 : vector<16x1xf32>
    %cst_7 = arith.constant 0.000000e+00 : f32
    %14 = vector.broadcast %cst_7 : f32 to vector<16x1xf32>
    %15 = arith.subf %14, %13 : vector<16x1xf32>
    %16 = math.exp %15 : vector<16x1xf32>
    %cst_8 = arith.constant 1.000000e+00 : f32
    %17 = vector.broadcast %cst_8 : f32 to vector<16x1xf32>
    %18 = arith.addf %17, %16 : vector<16x1xf32>
    %cst_9 = arith.constant 1.000000e+00 : f32
    %19 = vector.broadcast %cst_9 : f32 to vector<16x1xf32>
    %20 = arith.divf %19, %18 : vector<16x1xf32>
    %c0_10 = arith.constant 0 : index
    %c0_11 = arith.constant 0 : index
    %21 = vector.load %arg8[%c0_10, %c0_11] : memref<16x16xbf16, #tpu.memory_space<vmem>>, vector<16x16xbf16>
    %22 = arith.truncf %3 : vector<16x128xf32> to vector<16x128xbf16>
    %cst_12 = arith.constant dense<0.000000e+00> : vector<16x128xf32>
    %23 = tpu.matmul %21, %22, %cst_12 {dimension_numbers = #tpu.dot_dimension_numbers<[1], [0], [0], [1], [0, 0, 1, 1], [], []>} : vector<16x16xbf16>, vector<16x128xbf16>, vector<16x128xf32> -> vector<16x128xf32>
    %c0_13 = arith.constant 0 : index
    %c0_14 = arith.constant 0 : index
    %24 = vector.load %arg14[%c0_13, %c0_14] : memref<16x128xf32, #tpu.memory_space<vmem>>, vector<16x128xf32>
    %25 = arith.subf %24, %23 : vector<16x128xf32>
    %26 = vector.broadcast %20 : vector<16x1xf32> to vector<16x128xf32>
    %27 = arith.mulf %26, %25 : vector<16x128xf32>
    %28 = arith.addf %23, %27 : vector<16x128xf32>
    %29 = arith.sitofp %arg0 : i32 to f32
    %cst_15 = arith.constant 1.000000e+00 : f32
    %30 = arith.addf %29, %cst_15 : f32
    %cst_16 = arith.constant 5.000000e-01 : f32
    %31 = arith.divf %cst_16, %30 : f32
    %c0_17 = arith.constant 0 : index
    %c0_18 = arith.constant 0 : index
    %c0_19 = arith.constant 0 : index
    %32 = vector.load %arg9[%c0_17, %c0_18, %c0_19] : memref<1x128x128xf32, #tpu.memory_space<vmem>>, vector<1x128x128xf32>
    %33 = vector.shape_cast %32 : vector<1x128x128xf32> to vector<128x128xf32>
    %cst_20 = arith.constant dense<0.000000e+00> : vector<16x128xf32>
    %34 = tpu.matmul %28, %33, %cst_20 {dimension_numbers = #tpu.dot_dimension_numbers<[1], [0], [0], [1], [0, 0, 1, 1], [], []>} : vector<16x128xf32>, vector<128x128xf32>, vector<16x128xf32> -> vector<16x128xf32>
    %35 = arith.subf %34, %28 : vector<16x128xf32>
    %36 = vector.broadcast %31 : f32 to vector<16x128xf32>
    %37 = arith.mulf %36, %35 : vector<16x128xf32>
    %38 = arith.addf %28, %37 : vector<16x128xf32>
    %cst_21 = arith.constant 0.000000e+00 : f32
    %39 = vector.broadcast %cst_21 : f32 to vector<16x128xf32>
    %40 = arith.maximumf %38, %39 : vector<16x128xf32>
    %cst_22 = arith.constant dense<0.000000e+00> : vector<16xf32>
    %41 = vector.multi_reduction <add>, %40, %cst_22 [1] : vector<16x128xf32> to vector<16xf32>
    %42 = vector.shape_cast %41 : vector<16xf32> to vector<16x1xf32>
    %cst_23 = arith.constant 1.280000e+02 : f32
    %43 = vector.broadcast %cst_23 : f32 to vector<16x1xf32>
    %44 = arith.divf %42, %43 : vector<16x1xf32>
    %45 = vector.broadcast %44 : vector<16x1xf32> to vector<16x128xf32>
    %46 = arith.subf %40, %45 : vector<16x128xf32>
    %47 = arith.mulf %46, %46 : vector<16x128xf32>
    %cst_24 = arith.constant dense<0.000000e+00> : vector<16xf32>
    %48 = vector.multi_reduction <add>, %47, %cst_24 [1] : vector<16x128xf32> to vector<16xf32>
    %49 = vector.shape_cast %48 : vector<16xf32> to vector<16x1xf32>
    %cst_25 = arith.constant 1.280000e+02 : f32
    %50 = vector.broadcast %cst_25 : f32 to vector<16x1xf32>
    %51 = arith.divf %49, %50 : vector<16x1xf32>
    %cst_26 = arith.constant 9.99999974E-6 : f32
    %52 = vector.broadcast %cst_26 : f32 to vector<16x1xf32>
    %53 = arith.addf %51, %52 : vector<16x1xf32>
    %54 = math.rsqrt %53 : vector<16x1xf32>
    %55 = vector.broadcast %54 : vector<16x1xf32> to vector<16x128xf32>
    %56 = arith.mulf %46, %55 : vector<16x128xf32>
    %c0_27 = arith.constant 0 : index
    %c0_28 = arith.constant 0 : index
    %57 = vector.load %arg4[%c0_27, %c0_28] : memref<1x128xf32, #tpu.memory_space<vmem>>, vector<1x128xf32>
    %58 = vector.broadcast %57 : vector<1x128xf32> to vector<16x128xf32>
    %59 = arith.mulf %56, %58 : vector<16x128xf32>
    %c0_29 = arith.constant 0 : index
    %c0_30 = arith.constant 0 : index
    %60 = vector.load %arg5[%c0_29, %c0_30] : memref<1x128xf32, #tpu.memory_space<vmem>>, vector<1x128xf32>
    %61 = vector.broadcast %60 : vector<1x128xf32> to vector<16x128xf32>
    %62 = arith.addf %59, %61 : vector<16x128xf32>
    %c0_31 = arith.constant 0 : index
    %c0_32 = arith.constant 0 : index
    %63 = vector.load %arg13[%c0_31, %c0_32] : memref<16x128xf32, #tpu.memory_space<vmem>>, vector<16x128xf32>
    tpu.vector_store %arg13[%c0_31, %c0_32], %62 {strides = array<i32>} : memref<16x128xf32, #tpu.memory_space<vmem>>, vector<16x128xf32>,
    %c7_i32 = arith.constant 7 : i32
    %64 = arith.cmpi eq, %arg0, %c7_i32 : i32
    %65 = arith.extui %64 : i1 to i32
    %c0_i32_33 = arith.constant 0 : i32
    %66 = arith.cmpi ne, %65, %c0_i32_33 : i32
    scf.if %66 {
      %c0_34 = arith.constant 0 : index
      %c0_35 = arith.constant 0 : index
      %67 = vector.load %arg13[%c0_34, %c0_35] : memref<16x128xf32, #tpu.memory_space<vmem>>, vector<16x128xf32>
      %c0_36 = arith.constant 0 : index
      %c0_37 = arith.constant 0 : index
      %68 = vector.load %arg10[%c0_36, %c0_37] : memref<128x128xf32, #tpu.memory_space<vmem>>, vector<128x128xf32>
      %cst_38 = arith.constant dense<0.000000e+00> : vector<16x128xf32>
      %69 = tpu.matmul %67, %68, %cst_38 {dimension_numbers = #tpu.dot_dimension_numbers<[1], [0], [0], [1], [0, 0, 1, 1], [], []>} : vector<16x128xf32>, vector<128x128xf32>, vector<16x128xf32> -> vector<16x128xf32>
      %c0_39 = arith.constant 0 : index
      %c0_40 = arith.constant 0 : index
      %70 = vector.load %arg11[%c0_39, %c0_40] : memref<1x128xf32, #tpu.memory_space<vmem>>, vector<1x128xf32>
      %71 = vector.broadcast %70 : vector<1x128xf32> to vector<16x128xf32>
      %72 = arith.addf %69, %71 : vector<16x128xf32>
      %c0_41 = arith.constant 0 : index
      %c0_42 = arith.constant 0 : index
      %73 = vector.load %arg12[%c0_41, %c0_42] : memref<16x128xf32, #tpu.memory_space<vmem>>, vector<16x128xf32>
      tpu.vector_store %arg12[%c0_41, %c0_42], %72 {strides = array<i32>} : memref<16x128xf32, #tpu.memory_space<vmem>>, vector<16x128xf32>,
    } else {
    }
    return
  }
  func.func @transform_0(%arg0: i32) -> (i32, i32) {
    %c0_i32 = arith.constant 0 : i32
    %c0_i32_0 = arith.constant 0 : i32
    %c0_i32_1 = arith.constant 0 : i32
    return %c0_i32, %c0_i32_0 : i32, i32
  }
  func.func @transform_1(%arg0: i32) -> (i32, i32) {
    %c0_i32 = arith.constant 0 : i32
    %c0_i32_0 = arith.constant 0 : i32
    %c0_i32_1 = arith.constant 0 : i32
    return %c0_i32, %c0_i32_0 : i32, i32
  }
  func.func @transform_2(%arg0: i32) -> (i32, i32) {
    %c0_i32 = arith.constant 0 : i32
    %c0_i32_0 = arith.constant 0 : i32
    %c0_i32_1 = arith.constant 0 : i32
    return %c0_i32, %c0_i32_0 : i32, i32
  }
  func.func @transform_3(%arg0: i32) -> (i32, i32) {
    %c0_i32 = arith.constant 0 : i32
    %c0_i32_0 = arith.constant 0 : i32
    %c0_i32_1 = arith.constant 0 : i32
    return %c0_i32, %c0_i32_0 : i32, i32
  }
  func.func @transform_4(%arg0: i32) -> (i32, i32) {
    %c0_i32 = arith.constant 0 : i32
    %c0_i32_0 = arith.constant 0 : i32
    %c0_i32_1 = arith.constant 0 : i32
    return %c0_i32, %c0_i32_0 : i32, i32
  }
  func.func @transform_5(%arg0: i32) -> (i32, i32) {
    %c0_i32 = arith.constant 0 : i32
    %c0_i32_0 = arith.constant 0 : i32
    %c0_i32_1 = arith.constant 0 : i32
    return %c0_i32, %c0_i32_0 : i32, i32
  }
  func.func @transform_6(%arg0: i32) -> (i32, i32) {
    %c0_i32 = arith.constant 0 : i32
    %c0_i32_0 = arith.constant 0 : i32
    %c0_i32_1 = arith.constant 0 : i32
    return %c0_i32, %c0_i32_0 : i32, i32
  }
  func.func @transform_7(%arg0: i32) -> (i32, i32) {
    %c0_i32 = arith.constant 0 : i32
    %c0_i32_0 = arith.constant 0 : i32
    %c0_i32_1 = arith.constant 0 : i32
    return %c0_i32, %c0_i32_0 : i32, i32
  }
  func.func @transform_8(%arg0: i32) -> (i32, i32, i32) {
    %c0_i32 = arith.constant 0 : i32
    %c0_i32_0 = arith.constant 0 : i32
    %c0_i32_1 = arith.constant 0 : i32
    return %arg0, %c0_i32, %c0_i32_0 : i32, i32, i32
  }
  func.func @transform_9(%arg0: i32) -> (i32, i32) {
    %c0_i32 = arith.constant 0 : i32
    %c0_i32_0 = arith.constant 0 : i32
    %c0_i32_1 = arith.constant 0 : i32
    return %c0_i32, %c0_i32_0 : i32, i32
  }
  func.func @transform_10(%arg0: i32) -> (i32, i32) {
    %c0_i32 = arith.constant 0 : i32
    %c0_i32_0 = arith.constant 0 : i32
    %c0_i32_1 = arith.constant 0 : i32
    return %c0_i32, %c0_i32_0 : i32, i32
  }
  func.func @transform_11(%arg0: i32) -> (i32, i32) {
    %c0_i32 = arith.constant 0 : i32
    %c0_i32_0 = arith.constant 0 : i32
    %c0_i32_1 = arith.constant 0 : i32
    return %c0_i32, %c0_i32_0 : i32, i32
  }
}

</mosaic_0001>

<bundles_post_ra>
// kernel: tpu_custom_call.1
= control target key start
LH: loop header
LB: loop body
LE: loop exit
PB: predicated region body
PF: predicated region fallthrough
CT: control target
= control target key end

     0   :  { %s2467_s0 = inlined_call_operand.hbm [shape: f32[16,64], index: 0, kind: input, shape index: {}]   ;;  %s2468_s1 = inlined_call_operand.hbm [shape: f32[64,128], index: 1, kind: input, shape index: {}]   ;;  %s2469_s2 = inlined_call_operand.hbm [shape: f32[1,128], index: 2, kind: input, shape index: {}]   ;;  %s2470_s3 = inlined_call_operand.hbm [shape: f32[1,128], index: 3, kind: input, shape index: {}]   ;;  %s2471_s4 = inlined_call_operand.hbm [shape: f32[1,128], index: 4, kind: input, shape index: {}]   ;;  %s2472_s5 = inlined_call_operand.hbm [shape: f32[1,128], index: 5, kind: input, shape index: {}]   ;;  %s2473_s6 = inlined_call_operand.<no memory space> [shape: f32[1,1], index: 6, kind: input, shape index: {}]   ;;  %s2474_s7 = inlined_call_operand.hbm [shape: bf16[16,16], index: 7, kind: input, shape index: {}]   ;;  %s2475_s8 = inlined_call_operand.hbm [shape: f32[8,128,128], index: 8, kind: input, shape index: {}]   ;;  %s2476_s9 = inlined_call_operand.hbm [shape: f32[128,128], index: 9, kind: input, shape index: {}]   ;;  %s2477_s10 = inlined_call_operand.hbm [shape: f32[1,128], index: 10, kind: input, shape index: {}]   ;;  %s2478_s11 = inlined_call_operand.hbm [shape: f32[16,128], index: 11, kind: output, shape index: {}]  }
   0x1   :  { %2486 = sst [smem:[#allocation32_spill]] %s2468_s1  ;;  %v16_v0 = vstv %s2473_s6 }
   0x2   :  { %2487 = sst [smem:[#allocation33_spill]] %s2478_s11  ;;  %17 = vst [vmem:[#allocation4] sm:$0x1] %v16_v0 }
   0x3   :  { %18 = vsyncpa [#allocation6], 0 }
   0x4   :  { %19 = vsyncpa [#allocation9], 0 }
   0x5   :  { %20 = vsyncpa [#allocation12], 0 }
   0x6   :  { %21 = vsyncpa [#allocation15], 0 }
   0x7   :  { %22 = vsyncpa [#allocation18], 0 }
   0x8   :  { %24 = vsyncpa [#allocation18 + $0x1], 0 }
   0x9   :  { %25 = vsyncpa [#allocation21], 0 }
   0xa   :  { %26 = vsyncpa [#allocation7], 0  ;;  %s2070_s19 = smov 0   ;;  %s2072_s20 = smov 0  }
   0xb   :  { %s2074_s21 = smov 0   ;;  %s2076_s22 = smov 0  }
   0xc LB: > { %s2091_s6 = sadd.s32 4294967295, %s1985_s22   ;;  %p1177_p0 = scmp.ge.s32.totalorder %s1985_s22, 1  ;;  %s1985_s22 = sphi %s2076_s22, %s2517_s22   ;;  %s1981_s21 = sphi %s2074_s21, %s2516_s21   ;;  %s1977_s20 = sphi %s2072_s20, %s2515_s20   ;;  %s1973_s19 = sphi %s2070_s19, %s2514_s19  }
   0xd   : > { %p2483_p1 = scmp.eq.s32.totalorder %s2091_s6, 0  ;;  %p294_p2 = scmp.lt.s32.totalorder %s1985_s22, 9 }
   0xe   : > { %s1987_s24 = smov [#allocation8]   ;;  %s1988_s26 = smov [#allocation11]  }
   0xf   : > { %p2097_p4 = pnand %p1177_p0, %p294_p2  ;;  %s319_s25 = sshll.u32 %s1987_s24, 4  ;;  %s2101_s25 = int_to_ptr.vmem [resolvable:$true] %s319_s25 }
  0x10   : > { %s344_s27 = sshll.u32 %s1988_s26, 4  ;;  %s1989_s29 = smov [#allocation14]   ;;  %s2111_s27 = int_to_ptr.vmem [resolvable:$true] %s344_s27 }
  0x11   : > { %s2488_s23 = scalar_select %p2097_p4, 1, 0 }
  0x12   : > { %p1490_p5 = pneg %p2097_p4  ;;  %s366_s30 = sshll.u32 %s1989_s29, 4  ;;  %s2113_s30 = int_to_ptr.vmem [resolvable:$true] %s366_s30 }
  0x13   : > { %2489 = sst [smem:[#allocation31_spill]] %s2488_s23  ;;  %s2491_s1 = sld [smem:[#allocation32_spill]] }
  0x14   : > { %p2107_p6 = pnand %p1490_p5, %p2483_p1 }
  0x16   : > { %p2123_p8 = pneg %p2107_p6 }
  0x19   : > { %s1615_s14 = scalar_lea.hbm %s2491_s1, 1024 }
  0x1a   : > { %p1616_p7 = scmp.ne.s32.totalorder %s2491_s1, %s1615_s14  ;;  %p1622_p11 = scmp.lt.u32.totalorder %s1615_s14, %s2491_s1 }
  0x1c   : > { %p1618_p9 = pnand %p2123_p8, %p1616_p7 }
  0x1e   : > { %p1619_p10 = pneg %p1618_p9 }
  0x20   : > { %p1624_p12 = pnand %p1622_p11, %p1619_p10 }
  0x22   : > { %1627 = shalt.err (!%p1624_p12)
}
  0x23   : > { %s1628_s26 = scalar_lea.vmem %s2101_s25, 1024  ;;  %p1636_p5 = scmp.lt.s32.totalorder %s2101_s25, %s2101_s25 }
  0x24   : > { %p1629_p13 = scmp.ne.s32.totalorder %s2101_s25, %s1628_s26  ;;  %p1637_p3 = scmp.lt.s32.totalorder %s1628_s26, %s1628_s26 }
  0x26   : > { %p1631_p0 = pnand %p1629_p13, %p2123_p8  ;;  %p1638_p7 = por %p1637_p3, %p1636_p5 }
  0x28   : > { %p1632_p2 = pneg %p1631_p0 }
  0x2a   : > { %p1639_p9 = pnand %p1638_p7, %p1632_p2 }
  0x2c   : > { %1642 = shalt.err (!%p1639_p9)
}
  0x2d   : > { %s2481_s29 = smov 128   ;;  %s2485_s12 = smov 8  }
  0x2e   : > { %1496 = dma.hbm_to_vmem [thread:$0]  (!%p2107_p6), %s2491_s1, 1024, %s2101_s25, [#allocation9], %s2481_s29, %s2481_s29, %s2485_s12  }
  0x2f   : > { %s1643_s18 = scalar_lea.hbm %s2470_s3, 16 }
  0x30   : > { %p1644_p3 = scmp.ne.s32.totalorder %s2470_s3, %s1643_s18  ;;  %p1650_p12 = scmp.lt.u32.totalorder %s1643_s18, %s2470_s3 }
  0x32   : > { %p1646_p10 = pnand %p1644_p3, %p2123_p8 }
  0x34   : > { %p1647_p11 = pneg %p1646_p10 }
  0x36   : > { %p1652_p13 = pnand %p1650_p12, %p1647_p11 }
  0x38   : > { %1655 = shalt.err (!%p1652_p13)
}
  0x39   : > { %s1656_s25 = scalar_lea.vmem %s2111_s27, 16  ;;  %s1663_s13 = scalar_lea.vmem %s2111_s27, 32 }
  0x3a   : > { %p1657_p0 = scmp.ne.s32.totalorder %s2111_s27, %s1656_s25  ;;  %p1664_p7 = scmp.lt.s32.totalorder %s2111_s27, %s2111_s27 }
  0x3b   : > { %p1665_p9 = scmp.lt.s32.totalorder %s1663_s13, %s1656_s25 }
  0x3c   : > { %p1659_p2 = pnand %p1657_p0, %p2123_p8 }
  0x3d   : > { %p1666_p3 = por %p1665_p9, %p1664_p7 }
  0x3e   : > { %p1660_p5 = pneg %p1659_p2 }
  0x40   : > { %p1667_p10 = pnand %p1666_p3, %p1660_p5 }
  0x42   : > { %1670 = shalt.err (!%p1667_p10)
}
  0x43   : > { %1502 = dma.hbm_to_vmem [thread:$0]  (!%p2107_p6), %s2470_s3, 16, %s2111_s27, [#allocation12]  }
  0x44   : > { %s1671_s16 = scalar_lea.hbm %s2472_s5, 16 }
  0x45   : > { %p1672_p11 = scmp.ne.s32.totalorder %s2472_s5, %s1671_s16  ;;  %p1678_p0 = scmp.lt.u32.totalorder %s1671_s16, %s2472_s5 }
  0x47   : > { %p1674_p12 = pnand %p1672_p11, %p2123_p8 }
  0x49   : > { %p1675_p13 = pneg %p1674_p12 }
  0x4b   : > { %p1680_p2 = pnand %p1678_p0, %p1675_p13 }
  0x4d   : > { %1683 = shalt.err (!%p1680_p2)
}
  0x4e   : > { %s1684_s27 = scalar_lea.vmem %s2113_s30, 16  ;;  %s1691_s13 = scalar_lea.vmem %s2113_s30, 32 }
  0x4f   : > { %p1685_p5 = scmp.ne.s32.totalorder %s2113_s30, %s1684_s27  ;;  %p1692_p3 = scmp.lt.s32.totalorder %s2113_s30, %s2113_s30 }
  0x50   : > { %p1693_p10 = scmp.lt.s32.totalorder %s1691_s13, %s1684_s27 }
  0x51   : > { %p1687_p7 = pnand %p1685_p5, %p2123_p8 }
  0x52   : > { %p1694_p11 = por %p1693_p10, %p1692_p3 }
  0x53   : > { %p1688_p9 = pneg %p1687_p7 }
  0x55   : > { %p1695_p12 = pnand %p1694_p11, %p1688_p9 }
  0x57   : > { %1698 = shalt.err (!%p1695_p12)
}
  0x58   : > { %1508 = dma.hbm_to_vmem [thread:$0]  (!%p2107_p6), %s2472_s5, 16, %s2113_s30, [#allocation15]  }
  0x59   : > { %s1992_s14 = smov [#allocation19]   ;;  %s1993_s16 = smov [#allocation5]  }
  0x5a   : > { %s392_s15 = sshll.u32 %s1992_s14, 4  ;;  %s306_s18 = sshll.u32 %s1993_s16, 4  ;;  %s393_s15 = int_to_ptr.vmem [resolvable:$true] %s392_s15  ;;  %s307_s18 = int_to_ptr.vmem [resolvable:$true] %s306_s18 }
  0x5b   : > { %s1699_s25 = scalar_lea.hbm %s2476_s9, 2048 }
  0x5c   : > { %p1700_p13 = scmp.ne.s32.totalorder %s2476_s9, %s1699_s25  ;;  %p1706_p5 = scmp.lt.u32.totalorder %s1699_s25, %s2476_s9 }
  0x5e   : > { %p1702_p0 = pnand %p1700_p13, %p2123_p8 }
  0x60   : > { %p1703_p2 = pneg %p1702_p0 }
  0x62   : > { %p1708_p7 = pnand %p1706_p5, %p1703_p2 }
  0x64   : > { %1711 = shalt.err (!%p1708_p7)
}
  0x65   : > { %s1712_s30 = scalar_lea.vmem %s393_s15, 2048  ;;  %p1720_p11 = scmp.lt.s32.totalorder %s393_s15, %s393_s15 }
  0x66   : > { %p1713_p9 = scmp.ne.s32.totalorder %s393_s15, %s1712_s30  ;;  %p1721_p12 = scmp.lt.s32.totalorder %s1712_s30, %s1712_s30 }
  0x68   : > { %p1715_p3 = pnand %p1713_p9, %p2123_p8  ;;  %p1722_p1 = por %p1721_p12, %p1720_p11 }
  0x6a   : > { %p1716_p10 = pneg %p1715_p3 }
  0x6c   : > { %p1723_p4 = pnand %p1722_p1, %p1716_p10 }
  0x6e   : > { %1726 = shalt.err (!%p1723_p4)
}
  0x6f   : > { %s2493_s23 = smov 128   ;;  %s1727_s26 = scalar_lea.hbm %s2467_s0, 256 }
  0x70   : > { %1514 = dma.hbm_to_vmem [thread:$0]  (!%p2107_p6), %s2476_s9, 2048, %s393_s15, [#allocation18], %s2493_s23, %s2493_s23, %s2485_s12  }
  0x71   : > { %p1728_p1 = scmp.ne.s32.totalorder %s2467_s0, %s1727_s26  ;;  %p1734_p0 = scmp.lt.u32.totalorder %s1727_s26, %s2467_s0 }
  0x73   : > { %p1730_p4 = pnand %p1728_p1, %p2123_p8 }
  0x75   : > { %p1731_p13 = pneg %p1730_p4 }
  0x77   : > { %p1736_p2 = pnand %p1734_p0, %p1731_p13 }
  0x79   : > { %1739 = shalt.err (!%p1736_p2)
}
  0x7a   : > { %s1740_s30 = scalar_lea.vmem %s307_s18, 256  ;;  %p1748_p3 = scmp.lt.s32.totalorder %s307_s18, %s307_s18 }
  0x7b   : > { %p1741_p5 = scmp.ne.s32.totalorder %s307_s18, %s1740_s30  ;;  %p1749_p10 = scmp.lt.s32.totalorder %s1740_s30, %s1740_s30 }
  0x7d   : > { %p1743_p7 = pnand %p1741_p5, %p2123_p8  ;;  %p1750_p11 = por %p1749_p10, %p1748_p3 }
  0x7f   : > { %p1744_p9 = pneg %p1743_p7 }
  0x81   : > { %p1751_p12 = pnand %p1750_p11, %p1744_p9 }
  0x83   : > { %1754 = shalt.err (!%p1751_p12)
}
  0x84   : > { %1493 = dma.hbm_to_vmem [thread:$0]  (!%p2107_p6), %s2467_s0, 256, %s307_s18, [#allocation6], %s2493_s23, %s2493_s23, %s2485_s12  }
  0x85   : > { %s1994_s14 = smov [#allocation10]   ;;  %s1995_s24 = smov [#allocation13]  }
  0x86   : > { %s333_s16 = sshll.u32 %s1994_s14, 4  ;;  %s355_s26 = sshll.u32 %s1995_s24, 4  ;;  %s334_s16 = int_to_ptr.vmem [resolvable:$true] %s333_s16  ;;  %s356_s26 = int_to_ptr.vmem [resolvable:$true] %s355_s26 }
  0x87   : > { %s1755_s13 = scalar_lea.hbm %s2469_s2, 16 }
  0x88   : > { %p1756_p1 = scmp.ne.s32.totalorder %s2469_s2, %s1755_s13  ;;  %p1762_p0 = scmp.lt.u32.totalorder %s1755_s13, %s2469_s2 }
  0x8a   : > { %p1758_p4 = pnand %p1756_p1, %p2123_p8 }
  0x8c   : > { %p1759_p13 = pneg %p1758_p4 }
  0x8e   : > { %p1764_p2 = pnand %p1762_p0, %p1759_p13 }
  0x90   : > { %1767 = shalt.err (!%p1764_p2)
}
  0x91   : > { %s1768_s18 = scalar_lea.vmem %s334_s16, 16  ;;  %s1775_s29 = scalar_lea.vmem %s334_s16, 32 }
  0x92   : > { %p1769_p5 = scmp.ne.s32.totalorder %s334_s16, %s1768_s18  ;;  %p1776_p3 = scmp.lt.s32.totalorder %s334_s16, %s334_s16 }
  0x93   : > { %p1777_p10 = scmp.lt.s32.totalorder %s1775_s29, %s1768_s18 }
  0x94   : > { %p1771_p7 = pnand %p1769_p5, %p2123_p8 }
  0x95   : > { %p1778_p11 = por %p1777_p10, %p1776_p3 }
  0x96   : > { %p1772_p9 = pneg %p1771_p7 }
  0x98   : > { %p1779_p12 = pnand %p1778_p11, %p1772_p9 }
  0x9a   : > { %1782 = shalt.err (!%p1779_p12)
}
  0x9b   : > { %1499 = dma.hbm_to_vmem [thread:$0]  (!%p2107_p6), %s2469_s2, 16, %s334_s16, [#allocation9]  }
  0x9c   : > { %s1783_s27 = scalar_lea.hbm %s2471_s4, 16 }
  0x9d   : > { %p1784_p1 = scmp.ne.s32.totalorder %s2471_s4, %s1783_s27  ;;  %p1790_p0 = scmp.lt.u32.totalorder %s1783_s27, %s2471_s4 }
  0x9f   : > { %p1786_p4 = pnand %p1784_p1, %p2123_p8 }
  0xa1   : > { %p1787_p13 = pneg %p1786_p4 }
  0xa3   : > { %p1792_p2 = pnand %p1790_p0, %p1787_p13 }
  0xa5   : > { %1795 = shalt.err (!%p1792_p2)
}
  0xa6   : > { %s1796_s18 = scalar_lea.vmem %s356_s26, 16  ;;  %s1803_s16 = scalar_lea.vmem %s356_s26, 32 }
  0xa7   : > { %p1797_p5 = scmp.ne.s32.totalorder %s356_s26, %s1796_s18  ;;  %p1804_p3 = scmp.lt.s32.totalorder %s356_s26, %s356_s26 }
  0xa8   : > { %p1805_p10 = scmp.lt.s32.totalorder %s1803_s16, %s1796_s18 }
  0xa9   : > { %p1799_p7 = pnand %p1797_p5, %p2123_p8 }
  0xaa   : > { %p1806_p11 = por %p1805_p10, %p1804_p3 }
  0xab   : > { %p1800_p9 = pneg %p1799_p7 }
  0xad   : > { %p1807_p12 = pnand %p1806_p11, %p1800_p9 }
  0xaf   : > { %1810 = shalt.err (!%p1807_p12)
}
  0xb0   : > { %1505 = dma.hbm_to_vmem [thread:$0]  (!%p2107_p6), %s2471_s4, 16, %s356_s26, [#allocation12]  }
  0xb1   : > { %s1996_s24 = smov [#allocation16]   ;;  %s1811_s13 = scalar_lea.hbm %s2474_s7, 128 }
  0xb2   : > { %s379_s1 = sshll.u32 %s1996_s24, 4  ;;  %p1812_p1 = scmp.ne.s32.totalorder %s2474_s7, %s1811_s13  ;;  %s380_s1 = int_to_ptr.vmem [resolvable:$true] %s379_s1 }
  0xb3   : > { %p1818_p0 = scmp.lt.u32.totalorder %s1811_s13, %s2474_s7 }
  0xb4   : > { %p1814_p4 = pnand %p1812_p1, %p2123_p8 }
  0xb6   : > { %p1815_p13 = pneg %p1814_p4 }
  0xb8   : > { %p1820_p2 = pnand %p1818_p0, %p1815_p13 }
  0xba   : > { %1823 = shalt.err (!%p1820_p2)
}
  0xbb   : > { %s1824_s26 = scalar_lea.vmem %s380_s1, 128  ;;  %p1832_p3 = scmp.lt.s32.totalorder %s380_s1, %s380_s1 }
  0xbc   : > { %p1825_p5 = scmp.ne.s32.totalorder %s380_s1, %s1824_s26  ;;  %p1833_p10 = scmp.lt.s32.totalorder %s1824_s26, %s1824_s26 }
  0xbe   : > { %p1827_p7 = pnand %p1825_p5, %p2123_p8  ;;  %p1834_p11 = por %p1833_p10, %p1832_p3 }
  0xc0   : > { %p1828_p9 = pneg %p1827_p7 }
  0xc2   : > { %p1835_p12 = pnand %p1834_p11, %p1828_p9 }
  0xc4   : > { %1838 = shalt.err (!%p1835_p12)
}
  0xc5   : > { %s1997_s16 = smov 64   ;;  %s1998_s29 = smov 4  }
  0xc6   : > { %1511 = dma.hbm_to_vmem [thread:$0]  (!%p2107_p6), %s2474_s7, 128, %s380_s1, [#allocation15], %s1997_s16, %s1997_s16, %s1998_s29  }
  0xc7   : > { %s1999_s25 = smov [#allocation20]   ;;  %s1839_s30 = scalar_lea.hbm %s2477_s10, 16 }
  0xc8   : > { %s406_s27 = sshll.u32 %s1999_s25, 4  ;;  %p1840_p1 = scmp.ne.s32.totalorder %s2477_s10, %s1839_s30  ;;  %s407_s27 = int_to_ptr.vmem [resolvable:$true] %s406_s27 }
  0xc9   : > { %p1846_p0 = scmp.lt.u32.totalorder %s1839_s30, %s2477_s10 }
  0xca   : > { %p1842_p4 = pnand %p1840_p1, %p2123_p8 }
  0xcc   : > { %p1843_p13 = pneg %p1842_p4 }
  0xce   : > { %p1848_p2 = pnand %p1846_p0, %p1843_p13 }
  0xd0   : > { %1851 = shalt.err (!%p1848_p2)
}
  0xd1   : > { %s1852_s1 = scalar_lea.vmem %s407_s27, 16  ;;  %s1859_s16 = scalar_lea.vmem %s407_s27, 32 }
  0xd2   : > { %p1853_p5 = scmp.ne.s32.totalorder %s407_s27, %s1852_s1  ;;  %p1860_p3 = scmp.lt.s32.totalorder %s407_s27, %s407_s27 }
  0xd3   : > { %p1861_p10 = scmp.lt.s32.totalorder %s1859_s16, %s1852_s1 }
  0xd4   : > { %p1855_p7 = pnand %p1853_p5, %p2123_p8 }
  0xd5   : > { %p1862_p11 = por %p1861_p10, %p1860_p3 }
  0xd6   : > { %p1856_p9 = pneg %p1855_p7 }
  0xd8   : > { %p1863_p12 = pnand %p1862_p11, %p1856_p9 }
  0xda   : > { %1866 = shalt.err (!%p1863_p12)
}
  0xdb   : > { %1517 = dma.hbm_to_vmem [thread:$0]  (!%p2107_p6), %s2477_s10, 16, %s407_s27, [#allocation21]  }
  0xdc   : > { %s2310_s17 = sadd.s32 1, %s1985_s22   ;;  %s207_s12 = sadd.s32 1, %s1981_s21 }
  0xdd   : > { %s204_s28 = ssub.s32 %s1985_s22, %s2310_s17  ;;  %p214_p1 = scmp.ne.s32.totalorder %s1981_s21, %s1977_s20 }
  0xde   : > { %p205_p8 = scmp.eq.s32.totalorder %s204_s28, 0  ;;  %p215_p4 = scmp.eq.s32.totalorder %s1985_s22, 0 }
  0xdf   : > { %p220_p13 = scmp.ne.s32.totalorder %s1977_s20, %s1973_s19  ;;  %p2494_p2 = scmp.eq.s32.totalorder %s2091_s6, 0 }
  0xe0   : > { %s2321_s24 = scalar_select %p205_p8, %s1981_s21, %s207_s12  }
  0xe1   : > { %p216_p0 = por %p215_p4, %p214_p1  ;;  %p2325_p5 = por %p2494_p2, %p220_p13 }
  0xe2   : > { %p1531_p7 = scmp.lt.s32.totalorder %s1985_s22, 8  ;;  %s417_s13 = sand.u32 1, %s1985_s22  }
  0xe3   : > { %s419_s27 = sand.u32 1, %s1981_s21   ;;  %s1222_s30 = sshll.u32 %s1985_s22, 11 }
  0xe4   : > { %s1188_s11 = sshll.u32 %s419_s27, 7  ;;  %s2336_s26 = scalar_lea.hbm %s2475_s8, %s1222_s30 }
  0xe5   : > { %s421_s19 = scalar_lea.vmem [#allocation17], %s1188_s11  ;;  %p2338_p6 = pnand %p1531_p7, %p216_p0 }
  0xe6   : > { %s428_s1 = sshll.u32 %s421_s19, 4  ;;  %s2344_s22 = scalar_lea.sflag [#allocation18], %s417_s13  ;;  %s2342_s1 = int_to_ptr.vmem [resolvable:$true] %s428_s1 }
  0xe7   : > { %s1867_s29 = scalar_lea.hbm %s2336_s26, 2048  ;;  %p1869_p3 = pneg %p2338_p6 }
  0xe8   : > { %p1868_p9 = scmp.ne.s32.totalorder %s2336_s26, %s1867_s29  ;;  %s1872_s12 = scalar_lea.hbm %s2475_s8, 16384 }
  0xe9   : > { %p1873_p12 = scmp.lt.u32.totalorder %s2336_s26, %s2475_s8  ;;  %p1874_p8 = scmp.lt.u32.totalorder %s1872_s12, %s1867_s29 }
  0xea   : > { %p1870_p10 = pnand %p1869_p3, %p1868_p9  ;;  %p1876_p4 = scmp.lt.u32.totalorder %s1867_s29, %s2336_s26 }
  0xeb   : > { %p1875_p1 = por %p1874_p8, %p1873_p12 }
  0xec   : > { %p1871_p11 = pneg %p1870_p10 }
  0xed   : > { %p1877_p13 = por %p1876_p4, %p1875_p1 }
  0xef   : > { %p1878_p0 = pnand %p1877_p13, %p1871_p11 }
  0xf1   : > { %1881 = shalt.err (!%p1878_p0)
}
  0xf2   : > { %s1882_s13 = scalar_lea.vmem %s2342_s1, 2048  ;;  %s2000_s30 = smov [#allocation17]  }
  0xf3   : > { %p1883_p2 = scmp.ne.s32.totalorder %s2342_s1, %s1882_s13  ;;  %s1887_s15 = sshll.u32 %s2000_s30, 4  ;;  %s1888_s15 = int_to_ptr.vmem [resolvable:$false] %s1887_s15 }
  0xf4   : > { %s1889_s18 = scalar_lea.vmem %s1888_s15, 4096  ;;  %p1890_p10 = scmp.lt.s32.totalorder %s2342_s1, %s1888_s15 }
  0xf5   : > { %p1885_p7 = pnand %p1883_p2, %p1869_p3  ;;  %p1891_p12 = scmp.lt.s32.totalorder %s1889_s18, %s1882_s13 }
  0xf7   : > { %p1886_p9 = pneg %p1885_p7  ;;  %p1892_p8 = por %p1891_p12, %p1890_p10 }
  0xf9   : > { %p1893_p1 = pnand %p1892_p8, %p1886_p9 }
  0xfb   : > { %1896 = shalt.err (!%p1893_p1)
}
  0xfc   : > { %s2497_s19 = smov 8   ;;  %s2498_s29 = sld [smem:[#allocation31_spill]] }
  0xfd   : > { %1521 = dma.hbm_to_vmem [thread:$0]  (!%p2338_p6), %s2336_s26, 2048, %s2342_s1, %s2344_s22, %s2493_s23, %s2493_s23, %s2497_s19  }
 0x102   : > { %p2499_p3 = scmp.ne.s32.totalorder %s2498_s29, 0 }
 0x103   : > { %p2500_p11 = scmp.eq.s32.totalorder (!%p2499_p3), %s2091_s6, 0 }
 0x104   : > { %440 = sbr.rel (%p2499_p3) target bundleno = 1946 (0x79a), region = 64 }
 0x10b   : > { %1940 = dma.done.wait (%p2500_p11), [#allocation6], 256   ;;  %p2501_p4 = pmov %p2500_p11 }
 0x10d   : > { %1942 = vsyncadd (%p2501_p4), [#allocation6], 4294967040  ;;  %p2502_p13 = pmov %p2501_p4 }
 0x10e   : > { %p2503_p0 = pmov %p2501_p4 }
 0x10f   : > { %1944 = dma.done.wait (%p2502_p13), [#allocation9], 1040  }
 0x110   : > { %1946 = vsyncadd (%p2503_p0), [#allocation9], 4294966256  ;;  %p2504_p2 = pmov %p2503_p0 }
 0x111   : > { %p2505_p6 = pmov %p2503_p0 }
 0x112   : > { %1948 = dma.done.wait (%p2504_p2), [#allocation12], 32  }
 0x113   : > { %1950 = vsyncadd (%p2505_p6), [#allocation12], 4294967264  ;;  %p2506_p7 = pmov %p2503_p0 }
 0x114   : > { %p2507_p9 = pmov %p2503_p0 }
 0x115   : > { %1952 = dma.done.wait (%p2506_p7), [#allocation15], 144  }
 0x116   : > { %1954 = vsyncadd (%p2507_p9), [#allocation15], 4294967152  ;;  %s470_s23 = sand.u32 1, %s2091_s6   ;;  %s472_s26 = sand.u32 1, %s1977_s20  }
 0x117   : > { %s1199_s1 = sshll.u32 %s472_s26, 7  ;;  %s471_s16 = scalar_lea.sflag [#allocation18], %s470_s23 }
 0x118   : > { %s2395_s22 = scalar_lea.vmem [#allocation17], %s1199_s1 }
 0x119   : > { %1956 = dma.done.wait (%p2325_p5), %s471_s16, 2048  }
 0x11a   : > { %1958 = vsyncadd (%p2325_p5), %s471_s16, 4294965248  ;;  %p2508_p10 = pmov %p2503_p0 }
 0x11b   : > { %p2509_p12 = pmov %p2503_p0 }
 0x11c   : > { %1960 = dma.done.wait (%p2508_p10), [#allocation18], 2048  }
 0x11d   : > { %1962 = vsyncadd (%p2509_p12), [#allocation18], 4294965248  ;;  %p2510_p8 = pmov %p2503_p0 }
 0x11e   : > { %p2511_p1 = pmov %p2503_p0 }
 0x11f   : > { %1964 = dma.done.wait (%p2510_p8), [#allocation21], 16  }
 0x120   : > { %1966 = vsyncadd (%p2511_p1), [#allocation21], 4294967280  ;;  %p2512_p3 = scmp.ne.s32.totalorder %s2091_s6, 0 }
 0x121   : > { %v523_v1 = vld [vmem:[#allocation8] sm:$0xff] (!%p2512_p3)  ;;  %v524_v2 = vld [vmem:[#allocation8 + $0x8] sm:$0xff] (!%p2512_p3)  ;;  %v525_v3 = vld [vmem:[#allocation8 + $0x10] sm:$0xff] (!%p2512_p3)  ;;  %vm538_vm0 = vcmask (!%p2512_p3), 523264  }
 0x122   : > { %520 = sbr.rel (%p2512_p3) target bundleno = 839 (0x347), region = 108  ;;  %v1366_v4 = vpack.c.bf16 (!%p2512_p3), %v524_v2, %v523_v1  ;;  %v526_v5 = vld [vmem:[#allocation8 + $0x18] sm:$0xff] (!%p2512_p3)  ;;  %v527_v7 = vld [vmem:[#allocation8 + $0x20] sm:$0xff] (!%p2512_p3)  ;;  %v528_v8 = vld [vmem:[#allocation8 + $0x28] sm:$0xff] (!%p2512_p3) }
 0x123   : > { %v1370_v6 = vpack.c.bf16 (!%p2512_p3), %v526_v5, %v525_v3  ;;  %v521_v9 = vld [vmem:[#allocation5] sm:$0xff] (!%p2512_p3)  ;;  %v1374_v10 = vpack.c.bf16 (!%p2512_p3), %v528_v8, %v527_v7  ;;  %v530_v12 = vld [vmem:[#allocation8 + $0x38] sm:$0xff] (!%p2512_p3)  ;;  %v1203_v15 = vld [vmem:[#allocation10] ss:$0 sm:$0xff] (!%p2512_p3) }
 0x124   : > { %1367 = vmatprep.subr.bf16.mxu0 (!%p2512_p3), %v1366_v4  ;;  %1287 = vmatprep.mubr.msk.f32.mxu0 (!%p2512_p3), %vm538_vm0, %v521_v9  ;;  %v529_v11 = vld [vmem:[#allocation8 + $0x30] sm:$0xff] (!%p2512_p3)  ;;  %v522_v14 = vld [vmem:[#allocation5 + $0x8] sm:$0xff] (!%p2512_p3)  ;;  %v1206_v35 = vld [vmem:[#allocation11] ss:$0 sm:$0xff] (!%p2512_p3) }
 0x125   : > { %1369 = vmatpush3.bf16.msra.mxu0 (!%p2512_p3), %v1366_v4  ;;  %v1378_v13 = vpack.c.bf16 (!%p2512_p3), %v530_v12, %v529_v11  ;;  %v1207_v37 = vld [vmem:[#allocation13] ss:$0 sm:$0xff] (!%p2512_p3) }
 0x126   : > { %1371 = vmatprep.subr.bf16.mxu0 (!%p2512_p3), %v1370_v6 }
 0x129   : > { %1373 = vmatpush3.bf16.msra.mxu0 %v1370_v6 }
 0x12a   : > { %1375 = vmatprep.subr.bf16.mxu0 %v1374_v10 }
 0x12d   : > { %1377 = vmatpush3.bf16.msra.mxu0 %v1374_v10 }
 0x12e   : > { %1379 = vmatprep.subr.bf16.mxu0 %v1378_v13 }
 0x131   : > { %1381 = vmatpush3.bf16.msra.mxu0 %v1378_v13 }
 0x134   : > { %1288 = vmatmul.mubr.msk.f32.vlgmr.msra.gmra.mrb[0].mxu0 %vm538_vm0, %v522_v14 }
 0x207   : > { %v1289_v16 = vpop.f32.mrb[0].mxu0 }
 0x208   : > { %v611_v17 = vpop.f32.mrb[1].mxu0  ;;  %v617_v19 = vadd.f32 %v1289_v16, %v1203_v15 }
 0x209   : > { %v612_v18 = vadd.f32 %v1203_v15, %v611_v17 }
 0x20b   : > { %620 = vadd.xlane.f32.xlu0 %v612_v18 }
 0x20f   : > { %622 = vadd.xlane.f32.xlu0 %v617_v19 }
 0x298   : > { %v621_v20 = vpop.xlane.xlu0 %620 }
 0x299   : > { %v625_v21 = vmul.f32 0.0078125, %v621_v20 }
 0x29b   : > { %v627_v22 = vsub.f32 %v612_v18, %v625_v21 }
 0x29c   : > { %v623_v23 = vpop.xlane.xlu0 %622 }
 0x29d   : > { %v626_v24 = vmul.f32 0.0078125, %v623_v23  ;;  %v629_v25 = vmul.f32 %v627_v22, %v627_v22 }
 0x29f   : > { %v628_v26 = vsub.f32 %v617_v19, %v626_v24  ;;  %631 = vadd.xlane.f32.xlu1 %v629_v25 }
 0x2a1   : > { %v630_v27 = vmul.f32 %v628_v26, %v628_v26 }
 0x2a3   : > { %633 = vadd.xlane.f32.xlu1 %v630_v27 }
 0x32c   : > { %v632_v28 = vpop.xlane.xlu1 %631 }
 0x32d   : > { %v635_v29 = vmul.f32 0.0078125, %v632_v28 }
 0x32f   : > { %v637_v30 = vadd.f32 1e-05, %v635_v29 }
 0x330   : > { %v634_v31 = vpop.xlane.xlu1 %633 }
 0x331   : > { %1594 = vrsqrt.f32 %v637_v30  ;;  %v636_v32 = vmul.f32 0.0078125, %v634_v31 }
 0x333   : > { %v638_v33 = vadd.f32 1e-05, %v636_v32 }
 0x335   : > { %1596 = vrsqrt.f32 %v638_v33 }
 0x33b   : > { %v1595_v34 = vpop.eup %1594 }
 0x33c   : > { %v641_v36 = vmul.f32 %v1595_v34, %v627_v22 }
 0x33e   : > { %v650_v38 = vmul.f32 %v1206_v35, %v641_v36 }
 0x33f   : > { %v1597_v39 = vpop.eup %1596 }
 0x340   : > { %v659_v40 = vadd.f32 %v1207_v37, %v650_v38  ;;  %v642_v41 = vmul.f32 %v1597_v39, %v628_v26 }
 0x342   : > { %661 = vst [vmem:[#allocation3] sm:$0xff] %v659_v40  ;;  %663 = vst [vmem:[#allocation2] sm:$0xff] %v659_v40  ;;  %v651_v42 = vmul.f32 %v1206_v35, %v642_v41 }
 0x344   : > { %v660_v43 = vadd.f32 %v1207_v37, %v651_v42 }
 0x346   : > { %662 = vst [vmem:[#allocation3 + $0x8] sm:$0xff] %v660_v43  ;;  %664 = vst [vmem:[#allocation2 + $0x8] sm:$0xff] %v660_v43 }
 0x347 PF: > { %v1208_v45 = vld [vmem:[#allocation14] ss:$0 sm:$0xff]  ;;  %v2001_v48 = vmov 0.0   ;;  %vm2002_vm1 = vmmov 0   ;;  %v1600_v50 = vld [vmem:[#allocation16] sm:$0xff]   ;;  %vm711_vm2 = vcmask 130048   ;;  %s774_s25 = scvt.s32.f32 %s2091_s6 }
 0x348   : > { %1290 = vmatprep.subr.bf16.mxu0 %v2001_v48  ;;  %1292 = vmatprep.mubr.msk.bf16.mxu0 %vm2002_vm1, %v2001_v48  ;;  %v2003_v52 = vmov 0   ;;  %v780_v53 = vld [vmem:[%s2395_s22] sm:$0xff]  ;;  %v781_v54 = vld [vmem:[%s2395_s22 + $0x8] sm:$0xff]  ;;  %v782_v55 = vld [vmem:[%s2395_s22 + $0x10] sm:$0xff]  ;;  %p1216_p5 = scmp.ne.s32.totalorder %s2091_s6, 7 }
 0x349   : > { %v665_v44 = vld [vmem:[#allocation2] sm:$0xff]  ;;  %1598 = vset.pattern.permute.xlu1 %v2003_v52  ;;  %1599 = vset.pattern.permute.xlu0 %v2003_v52  ;;  %v1382_v56 = vpack.c.bf16 %v781_v54, %v780_v53  ;;  %v785_v60 = vld [vmem:[%s2395_s22 + $0x28] sm:$0xff]  ;;  %v786_v62 = vld [vmem:[%s2395_s22 + $0x30] sm:$0xff]  ;;  %s775_s14 = sadd.f32 1.0, %s774_s25 }
 0x34a   : > { %v674_v47 = vmul.f32 %v1208_v45, %v665_v44  ;;  %v783_v57 = vld [vmem:[%s2395_s22 + $0x18] sm:$0xff]  ;;  %v784_v59 = vld [vmem:[%s2395_s22 + $0x20] sm:$0xff]  ;;  %v789_v2 = vld [vmem:[%s2395_s22 + $0x48] sm:$0xff] }
 0x34b   : > { %v1386_v58 = vpack.c.bf16 %v783_v57, %v782_v55  ;;  %1383 = vmatprep.subr.bf16.mxu1 %v1382_v56  ;;  %v1390_v61 = vpack.c.bf16 %v785_v60, %v784_v59  ;;  %v787_v63 = vld [vmem:[%s2395_s22 + $0x38] sm:$0xff]  ;;  %v788_v1 = vld [vmem:[%s2395_s22 + $0x40] sm:$0xff]  ;;  %v790_v4 = vld [vmem:[%s2395_s22 + $0x50] sm:$0xff]  ;;  %v776_v30 = vstv %s775_s14 }
 0x34c   : > { %676 = vadd.xlane.f32.xlu0 %v674_v47  ;;  %1385 = vmatpush3.bf16.msra.mxu1 %v1382_v56  ;;  %v1394_v0 = vpack.c.bf16 %v787_v63, %v786_v62  ;;  %v1398_v3 = vpack.c.bf16 %v789_v2, %v788_v1  ;;  %v791_v5 = vld [vmem:[%s2395_s22 + $0x58] sm:$0xff]  ;;  %v792_v22 = vld [vmem:[%s2395_s22 + $0x60] sm:$0xff]  ;;  %v793_v23 = vld [vmem:[%s2395_s22 + $0x68] sm:$0xff] }
 0x34d   : > { %v666_v46 = vld [vmem:[#allocation2 + $0x8] sm:$0xff]  ;;  %1387 = vmatprep.subr.bf16.mxu1 %v1386_v58  ;;  %v1402_v6 = vpack.c.bf16 %v791_v5, %v790_v4  ;;  %v1209_v7 = vld [vmem:[#allocation4] ss:$0 sm:$0xff]  ;;  %v1406_v24 = vpack.c.bf16 %v793_v23, %v792_v22  ;;  %v794_v26 = vld [vmem:[%s2395_s22 + $0x70] sm:$0xff] }
 0x34e   : > { %v705_v49 = vpack.c.bf16 %v666_v46, %v665_v44  ;;  %v675_v51 = vmul.f32 %v1208_v45, %v666_v46  ;;  %v795_v27 = vld [vmem:[%s2395_s22 + $0x78] sm:$0xff]  ;;  %v756_v36 = vld [vmem:[#allocation3] sm:$0xff]  ;;  %v933_v23 = vld [vmem:[#allocation19 + $0x20] sm:$0xff] (!%p1216_p5) }
 0x34f   : > { %v1410_v28 = vpack.c.bf16 %v795_v27, %v794_v26  ;;  %v757_v38 = vld [vmem:[#allocation3 + $0x8] sm:$0xff] }
 0x350   : > { %1291 = vmatpush3.bf16.msra.mxu0 %v705_v49  ;;  %678 = vadd.xlane.f32.xlu0 %v675_v51  ;;  %v935_v27 = vld [vmem:[#allocation19 + $0x30] sm:$0xff] (!%p1216_p5) }
 0x351   : > { %1389 = vmatpush3.bf16.msra.mxu1 %v1386_v58 }
 0x352   : > { %1391 = vmatprep.subr.bf16.mxu1 %v1390_v61 }
 0x353   : > { %1293 = vmatmul.mubr.msk.bf16.vlgmr.msra.gmra.mrb[0].mxu0 %vm711_vm2, %v1600_v50 }
 0x355   : > { %1393 = vmatpush3.bf16.msra.mxu1 %v1390_v61 }
 0x356   : > { %1395 = vmatprep.subr.bf16.mxu1 %v1394_v0 }
 0x359   : > { %1397 = vmatpush3.bf16.msra.mxu1 %v1394_v0 }
 0x35a   : > { %1399 = vmatprep.subr.bf16.mxu1 %v1398_v3 }
 0x35d   : > { %1401 = vmatpush3.bf16.msra.mxu1 %v1398_v3 }
 0x35e   : > { %1403 = vmatprep.subr.bf16.mxu1 %v1402_v6 }
 0x361   : > { %1405 = vmatpush3.bf16.msra.mxu1 %v1402_v6 }
 0x362   : > { %1407 = vmatprep.subr.bf16.mxu1 %v1406_v24 }
 0x365   : > { %1409 = vmatpush3.bf16.msra.mxu1 %v1406_v24  ;;  %v934_v24 = vld [vmem:[#allocation19 + $0x28] sm:$0xff] (!%p1216_p5) }
 0x366   : > { %1411 = vmatprep.subr.bf16.mxu1 %v1410_v28 }
 0x369   : > { %1413 = vmatpush3.bf16.msra.mxu1 %v1410_v28  ;;  %v936_v28 = vld [vmem:[#allocation19 + $0x38] sm:$0xff] (!%p1216_p5) }
 0x3d9   : > { %v677_v8 = vpop.xlane.xlu0 %676 }
 0x3da   : > { %v687_v9 = vadd.f32 %v1209_v7, %v677_v8  ;;  %v1214_v8 = vld [vmem:[#allocation11] ss:$0 sm:$0xff] }
 0x3dc   : > { %v1210_v10 = vadd.f32 -1.0, %v687_v9 }
 0x3dd   : > { %v679_v11 = vpop.xlane.xlu0 %678 }
 0x3de   : > { %v691_v12 = vsub.f32 0.0, %v1210_v10  ;;  %v688_v13 = vadd.f32 %v1209_v7, %v679_v11  ;;  %v1215_v10 = vld [vmem:[#allocation13] ss:$0 sm:$0xff] }
 0x3e0   : > { %v693_v14 = vmul.f32 1.442695, %v691_v12  ;;  %v1211_v15 = vadd.f32 -1.0, %v688_v13 }
 0x3e2   : > { %1601 = vpow2.f32 %v693_v14  ;;  %v692_v16 = vsub.f32 0.0, %v1211_v15 }
 0x3e4   : > { %v695_v17 = vmul.f32 1.442695, %v692_v16 }
 0x3e6   : > { %1603 = vpow2.f32 %v695_v17  ;;  %v929_v17 = vld [vmem:[#allocation19] sm:$0xff] (!%p1216_p5) }
 0x3ec   : > { %v1602_v18 = vpop.eup %1601 }
 0x3ed   : > { %v697_v19 = vadd.f32 1.0, %v1602_v18  ;;  %v930_v18 = vld [vmem:[#allocation19 + $0x8] sm:$0xff] (!%p1216_p5) }
 0x3ef   : > { %1605 = vrcp.f32 %v697_v19  ;;  %v931_v19 = vld [vmem:[#allocation19 + $0x10] sm:$0xff] (!%p1216_p5) }
 0x3f0   : > { %v1604_v20 = vpop.eup %1603 }
 0x3f1   : > { %v698_v21 = vadd.f32 1.0, %v1604_v20  ;;  %v1414_v20 = vpack.c.bf16 (!%p1216_p5), %v930_v18, %v929_v17 }
 0x3f3   : > { %1607 = vrcp.f32 %v698_v21  ;;  %v932_v21 = vld [vmem:[#allocation19 + $0x18] sm:$0xff] (!%p1216_p5)  ;;  %1415 = vmatprep.subr.bf16.mxu0 (!%p1216_p5), %v1414_v20 }
 0x3f4   : > { %1609 = vrcp.f32 %v776_v30  ;;  %v1418_v22 = vpack.c.bf16 (!%p1216_p5), %v932_v21, %v931_v19  ;;  %1417 = vmatpush3.bf16.msra.mxu0 (!%p1216_p5), %v1414_v20  ;;  %v937_v30 = vld [vmem:[#allocation19 + $0x40] sm:$0xff] (!%p1216_p5) }
 0x3f6   : > { %1419 = vmatprep.subr.bf16.mxu0 (!%p1216_p5), %v1418_v22 }
 0x3f8   : > { %1421 = vmatpush3.bf16.msra.mxu0 (!%p1216_p5), %v1418_v22 }
 0x3f9   : > { %v1606_v25 = vpop.eup %1605 }
 0x3fa   : > { %762 = vperm.xlu1 %1598, %v1606_v25   ;;  %v1422_v25 = vpack.c.bf16 (!%p1216_p5), %v934_v24, %v933_v23 }
 0x3fc   : > { %1423 = vmatprep.subr.bf16.mxu0 (!%p1216_p5), %v1422_v25 }
 0x3fd   : > { %v1608_v29 = vpop.eup %1607  ;;  %1425 = vmatpush3.bf16.msra.mxu0 (!%p1216_p5), %v1422_v25 }
 0x3fe   : > { %767 = vperm.xlu1 %1598, %v1608_v29   ;;  %v1610_v31 = vpop.eup %1609  ;;  %v1426_v29 = vpack.c.bf16 (!%p1216_p5), %v936_v28, %v935_v27 }
 0x3ff   : > { %1446 = vpush %v1610_v31  ;;  %v938_v31 = vld [vmem:[#allocation19 + $0x48] sm:$0xff] (!%p1216_p5) }
 0x400   : > { %1427 = vmatprep.subr.bf16.mxu0 (!%p1216_p5), %v1426_v29 }
 0x401   : > { %1429 = vmatpush3.bf16.msra.mxu0 (!%p1216_p5), %v1426_v29 }
 0x426   : > { %v749_v32 = vpop.f32.mrb[0].mxu0 }
 0x427   : > { %v1294_v33 = vpop.f32.mrb[1].mxu0  ;;  %v758_v37 = vsub.f32 %v756_v36, %v749_v32  ;;  %v941_v36 = vld [vmem:[#allocation19 + $0x60] sm:$0xff] (!%p1216_p5) }
 0x428   : > { %v752_v34 = vpop.f32.mrb[2].mxu0  ;;  %v939_v33 = vld [vmem:[#allocation19 + $0x50] sm:$0xff] (!%p1216_p5) }
 0x429   : > { %v1295_v35 = vpop.f32.mrb[3].mxu0  ;;  %v759_v41 = vsub.f32 %v757_v38, %v752_v34 }
 0x430   : > { %s1447_s28 = spop %1446 }
 0x431   : > { %s779_s12 = smul.f32 0.5, %s1447_s28 }
 0x433   : > { %v873_v46 = vstv %s779_s12 }
 0x479   : > { %v763_v39 = vpop.permute.xlu1 %762 }
 0x47a   : > { %v770_v40 = vmul.f32 %v763_v39, %v758_v37  ;;  %v942_v37 = vld [vmem:[#allocation19 + $0x68] sm:$0xff] (!%p1216_p5)  ;;  %v943_v39 = vld [vmem:[#allocation19 + $0x70] sm:$0xff] (!%p1216_p5) }
 0x47b   : > { %v1438_v38 = vpack.c.bf16 (!%p1216_p5), %v942_v37, %v941_v36 }
 0x47c   : > { %v772_v42 = vadd.f32 %v770_v40, %v749_v32  ;;  %v1430_v32 = vpack.c.bf16 (!%p1216_p5), %v938_v31, %v937_v30  ;;  %v944_v40 = vld [vmem:[#allocation19 + $0x78] sm:$0xff] (!%p1216_p5) }
 0x47d   : > { %v768_v43 = vpop.permute.xlu1 %767 }
 0x47e   : > { %v771_v44 = vmul.f32 %v768_v43, %v759_v41  ;;  %1328 = vmatprep.mubr.f32.mxu1 %v772_v42  ;;  %1431 = vmatprep.subr.bf16.mxu0 (!%p1216_p5), %v1430_v32  ;;  %v1442_v41 = vpack.c.bf16 (!%p1216_p5), %v944_v40, %v943_v39  ;;  %v1217_v43 = vld [vmem:[#allocation20] ss:$0 sm:$0xff] (!%p1216_p5) }
 0x47f   : > { %1433 = vmatpush3.bf16.msra.mxu0 (!%p1216_p5), %v1430_v32 }
 0x480   : > { %v773_v45 = vadd.f32 %v771_v44, %v752_v34  ;;  %v940_v34 = vld [vmem:[#allocation19 + $0x58] sm:$0xff] (!%p1216_p5) }
 0x481   : > { %v1434_v35 = vpack.c.bf16 (!%p1216_p5), %v940_v34, %v939_v33 }
 0x482   : > { %1329 = vmatmul.mubr.f32.vlgmr.msra.gmra.mrb[0].mxu1 %v773_v45 }
 0x483   : > { %1435 = vmatprep.subr.bf16.mxu0 (!%p1216_p5), %v1434_v35 }
 0x484   : > { %1437 = vmatpush3.bf16.msra.mxu0 (!%p1216_p5), %v1434_v35 }
 0x485   : > { %1439 = vmatprep.subr.bf16.mxu0 (!%p1216_p5), %v1438_v38 }
 0x488   : > { %1441 = vmatpush3.bf16.msra.mxu0 (!%p1216_p5), %v1438_v38 }
 0x489   : > { %1443 = vmatprep.subr.bf16.mxu0 (!%p1216_p5), %v1442_v41 }
 0x48c   : > { %1445 = vmatpush3.bf16.msra.mxu0 (!%p1216_p5), %v1442_v41 }
 0x555   : > { %v1330_v47 = vpop.f32.mrb[0].mxu1 }
 0x556   : > { %v872_v48 = vsub.f32 %v1330_v47, %v773_v45  ;;  %v862_v49 = vpop.f32.mrb[1].mxu1 }
 0x557   : > { %v871_v50 = vsub.f32 %v862_v49, %v772_v42 }
 0x558   : > { %v875_v51 = vmul.f32 %v873_v46, %v872_v48 }
 0x559   : > { %v874_v52 = vmul.f32 %v873_v46, %v871_v50 }
 0x55a   : > { %v877_v53 = vadd.f32 %v875_v51, %v773_v45 }
 0x55b   : > { %v876_v54 = vadd.f32 %v874_v52, %v772_v42 }
 0x55c   : > { %v879_v55 = vmax.f32 %v877_v53, 0.0 }
 0x55d   : > { %v878_v56 = vmax.f32 %v876_v54, 0.0 }
 0x55e   : > { %882 = vadd.xlane.f32.xlu1 %v879_v55 }
 0x55f   : > { %880 = vadd.xlane.f32.xlu0 %v878_v56 }
 0x5eb   : > { %v883_v57 = vpop.xlane.xlu1 %882 }
 0x5ec   : > { %v881_v58 = vpop.xlane.xlu0 %880  ;;  %v886_v59 = vmul.f32 0.0078125, %v883_v57 }
 0x5ed   : > { %v885_v60 = vmul.f32 0.0078125, %v881_v58 }
 0x5ee   : > { %v888_v62 = vsub.f32 %v879_v55, %v886_v59 }
 0x5ef   : > { %v887_v61 = vsub.f32 %v878_v56, %v885_v60 }
 0x5f0   : > { %v890_v0 = vmul.f32 %v888_v62, %v888_v62 }
 0x5f1   : > { %v889_v63 = vmul.f32 %v887_v61, %v887_v61 }
 0x5f3   : > { %891 = vadd.xlane.f32.xlu0 %v889_v63 }
 0x5f7   : > { %893 = vadd.xlane.f32.xlu0 %v890_v0 }
 0x680   : > { %v892_v1 = vpop.xlane.xlu0 %891 }
 0x681   : > { %v895_v2 = vmul.f32 0.0078125, %v892_v1 }
 0x683   : > { %v897_v3 = vadd.f32 1e-05, %v895_v2 }
 0x684   : > { %v894_v4 = vpop.xlane.xlu0 %893 }
 0x685   : > { %1611 = vrsqrt.f32 %v897_v3  ;;  %v896_v5 = vmul.f32 0.0078125, %v894_v4 }
 0x687   : > { %v898_v6 = vadd.f32 1e-05, %v896_v5 }
 0x689   : > { %1613 = vrsqrt.f32 %v898_v6 }
 0x68f   : > { %v1612_v7 = vpop.eup %1611 }
 0x690   : > { %v901_v9 = vmul.f32 %v1612_v7, %v887_v61 }
 0x692   : > { %v910_v11 = vmul.f32 %v1214_v8, %v901_v9 }
 0x693   : > { %v1614_v12 = vpop.eup %1613 }
 0x694   : > { %v919_v13 = vadd.f32 %v1215_v10, %v910_v11  ;;  %v902_v14 = vmul.f32 %v1614_v12, %v888_v62  ;;  %926 = sbr.rel (%p1216_p5) target bundleno = 1914 (0x77a), region = 112 }
 0x696   : > { %921 = vst [vmem:[#allocation2] sm:$0xff] %v919_v13  ;;  %v911_v15 = vmul.f32 %v1214_v8, %v902_v14 }
 0x698   : > { %v920_v16 = vadd.f32 %v1215_v10, %v911_v15 }
 0x69a   : > { %922 = vst [vmem:[#allocation2 + $0x8] sm:$0xff] %v920_v16 }
 0x69d   : > { %v927_v26 = vld [vmem:[#allocation2] sm:$0xff] }
 0x69e   : > { %1363 = vmatprep.mubr.f32.mxu0 %v927_v26 }
 0x6a1   : > { %v928_v42 = vld [vmem:[#allocation2 + $0x8] sm:$0xff] }
 0x6a2   : > { %1364 = vmatmul.mubr.f32.vlgmr.msra.gmra.mrb[0].mxu0 %v928_v42 }
 0x775   : > { %v1365_v44 = vpop.f32.mrb[0].mxu0 }
 0x776   : > { %v1024_v45 = vadd.f32 %v1365_v44, %v1217_v43  ;;  %v1018_v46 = vpop.f32.mrb[1].mxu0 }
 0x777   : > { %v1019_v47 = vadd.f32 %v1217_v43, %v1018_v46 }
 0x778   : > { %1028 = vst [vmem:[#allocation22 + $0x8] sm:$0xff] %v1024_v45 }
 0x779   : > { %1027 = vst [vmem:[#allocation22] sm:$0xff] %v1019_v47 }
 0x77a PF: > { %p1541_p11 = scmp.eq.s32.totalorder %s2091_s6, 7  ;;  %s2004_s27 = smov [#allocation22]  }
 0x77b   : > { %s1035_s11 = sshll.u32 %s2004_s27, 4  ;;  %s1036_s11 = int_to_ptr.vmem [resolvable:$true] %s1035_s11 }
 0x77c   : > { %s1897_s13 = scalar_lea.vmem %s1036_s11, 256  ;;  %p1904_p2 = scmp.lt.s32.totalorder %s1036_s11, %s1036_s11 }
 0x77d   : > { %p1898_p4 = scmp.ne.s32.totalorder %s1036_s11, %s1897_s13  ;;  %p1905_p6 = scmp.lt.s32.totalorder %s1897_s13, %s1897_s13 }
 0x77f   : > { %p1899_p13 = pnand %p1898_p4, %p1541_p11  ;;  %p1906_p7 = por %p1905_p6, %p1904_p2 }
 0x781   : > { %p1900_p0 = pneg %p1899_p13 }
 0x783   : > { %p1907_p9 = pnand %p1906_p7, %p1900_p0 }
 0x785   : > { %1910 = shalt.err (!%p1907_p9)
}
 0x786   : > { %s2513_s18 = sld [smem:[#allocation33_spill]] }
 0x78c   : > { %s1911_s19 = scalar_lea.hbm %s2513_s18, 256 }
 0x78d   : > { %p1912_p10 = scmp.ne.s32.totalorder %s2513_s18, %s1911_s19  ;;  %p1917_p1 = scmp.lt.u32.totalorder %s1911_s19, %s2513_s18 }
 0x78f   : > { %p1913_p12 = pnand %p1912_p10, %p1541_p11 }
 0x791   : > { %p1914_p8 = pneg %p1913_p12 }
 0x793   : > { %p1919_p3 = pnand %p1917_p1, %p1914_p8 }
 0x795   : > { %1922 = shalt.err (!%p1919_p3)
}
 0x796   : > { %s2005_s16 = smov 128   ;;  %s2006_s22 = smov 8  }
 0x797   : > { %1487 = dma.vmem_to_hbm [thread:$0]  (%p1541_p11), %s1036_s11, 256, %s2513_s18, [#allocation7], %s2005_s16, %s2005_s16, %s2006_s22  }
 0x798   : > { %1968 = dma.done.wait (%p1541_p11), [#allocation7], 256  }
 0x799   : > { %1970 = vsyncadd (%p1541_p11), [#allocation7], 4294967040 }
 0x79a PF: > { %p29_p5 = scmp.ge.s32.totalorder %s2310_s17, 10   ;;  %s2514_s19 = smov %s1977_s20 }
 0x79b   : > { %s2515_s20 = smov %s1981_s21  ;;  %s2516_s21 = smov %s2321_s24 }
 0x79c   : > { %s2517_s22 = smov %s2310_s17  ;;  %31 = sbr.rel (!%p29_p5) target bundleno = 12 (0xc), region = 146 }
 0x7a3   :  { %1051 = vsyncpa [#allocation6], 1 }
 0x7a4   :  { %1053 = vsyncpa [#allocation6 + $0x1], 1 }
 0x7a5   :  { %1054 = vsyncpa [#allocation9], 1 }
 0x7a6   :  { %1055 = vsyncpa [#allocation12], 1 }
 0x7a7   :  { %1056 = vsyncpa [#allocation15], 1 }
 0x7a8   :  { %1057 = vsyncpa [#allocation18], 1 }
 0x7a9   :  { %1059 = vsyncpa [#allocation18 + $0x1], 1 }
 0x7aa   :  { %1060 = vsyncpa [#allocation21], 1 }
 0x7ab   :  { %1061 = vsyncpa [#allocation7], 1 }
 0x7ac   :  { %1063 = vsyncpa [#allocation7 + $0x1], 1 }

</bundles_post_ra>
